<compile_context>
chip_gen: v7x
topology: tpu7x:2x2x1
jax: 0.10.0
libtpu: 0.0.40
codegen_flags: <defaults>
</compile_context>

<pallas_src>
import functools

import jax
import jax.numpy as jnp
from jax.experimental import pallas as pl
from jax.experimental.pallas import tpu as pltpu


_MASK_VALUE = -1e30  # finite mask value keeps online-softmax NaN-free per tile


def _pick_tile(dim, target, align):
    """Largest divisor of `dim` that is <= target and a multiple of `align`,
    or the full dim (full-extent blocks are always legal)."""
    if dim <= target:
        return dim
    for t in range(target, 0, -1):
        if dim % t == 0 and t % align == 0:
            return t
    return dim


# ----------------------------- projection matmul ----------------------------

def _matmul_kernel(x_ref, w_ref, o_ref, acc_ref):
    # x: (tm, tk), w: (tk, tn) -> acc (tm, tn) f32, written back on last k step.
    @pl.when(pl.program_id(2) == 0)
    def _():
        acc_ref[...] = jnp.zeros_like(acc_ref)

    acc_ref[...] += jnp.dot(x_ref[...], w_ref[...],
                            preferred_element_type=jnp.float32)

    @pl.when(pl.program_id(2) == pl.num_programs(2) - 1)
    def _():
        o_ref[...] = acc_ref[...].astype(o_ref.dtype)


def pallas_linear(x, w_t, *, tm=256, tn=256, tk=512):
    """y = x @ w_t, with w_t pre-transposed to (K, N). x: (M, K)."""
    M, K = x.shape
    K2, N = w_t.shape
    assert K == K2
    tm = _pick_tile(M, tm, 8)
    tn = _pick_tile(N, tn, 128)
    tk = _pick_tile(K, tk, 128)
    grid = (M // tm, N // tn, K // tk)
    return pl.pallas_call(
        _matmul_kernel,
        out_shape=jax.ShapeDtypeStruct((M, N), jnp.float32),
        grid_spec=pltpu.PrefetchScalarGridSpec(
            num_scalar_prefetch=0,
            grid=grid,
            in_specs=[pl.BlockSpec((tm, tk), lambda i, j, k: (i, k)),
                      pl.BlockSpec((tk, tn), lambda i, j, k: (k, j))],
            out_specs=pl.BlockSpec((tm, tn), lambda i, j, k: (i, j)),
            scratch_shapes=[pltpu.VMEM((tm, tn), jnp.float32)]),
        compiler_params=pltpu.CompilerParams(
            dimension_semantics=("parallel", "parallel", "arbitrary")),
    )(x, w_t)


# ------------------------------ flash attention ------------------------------

def _flash_attn_kernel(q_ref, k_ref, v_ref, o_ref, m_sc, l_sc, acc_sc, *,
                       masked, scale, tq, tkv):
    # Blocks are (1, 1, tq/tkv, D) for one (batch, q-head, q-tile); kv-tile is the
    # innermost ("arbitrary") grid axis, so scratch carries the online softmax.
    qi = pl.program_id(2)
    ki = pl.program_id(3)
    n_kv = pl.num_programs(3)

    @pl.when(ki == 0)
    def _init():
        m_sc[...] = jnp.full_like(m_sc, -jnp.inf)
        l_sc[...] = jnp.zeros_like(l_sc)
        acc_sc[...] = jnp.zeros_like(acc_sc)

    def compute():
        q = q_ref[0, 0] * scale              # (tq, D)  scale folded into q
        k = k_ref[0, 0]                      # (tkv, D)
        v = v_ref[0, 0]                      # (tkv, D)
        # QK^T without materializing k.T: contract the last dim of both operands.
        s = jax.lax.dot_general(q, k, (((1,), (1,)), ((), ())),
                                preferred_element_type=jnp.float32)  # (tq, tkv)
        if masked:
            row = qi * tq + jax.lax.broadcasted_iota(jnp.int32, (tq, tkv), 0)
            col = ki * tkv + jax.lax.broadcasted_iota(jnp.int32, (tq, tkv), 1)
            s = jnp.where(col <= row, s, _MASK_VALUE)

        m_prev = m_sc[...]
        m_new = jnp.maximum(m_prev, jnp.max(s, axis=-1, keepdims=True))
        alpha = jnp.exp(m_prev - m_new)
        p = jnp.exp(s - m_new)
        l_sc[...] = alpha * l_sc[...] + jnp.sum(p, axis=-1, keepdims=True)
        acc_sc[...] = alpha * acc_sc[...] + jnp.dot(
            p, v, preferred_element_type=jnp.float32)
        m_sc[...] = m_new

    if masked:
        # Skip KV tiles that lie entirely above the causal diagonal of this q tile.
        pl.when(ki * tkv <= qi * tq + (tq - 1))(compute)
    else:
        compute()

    @pl.when(ki == n_kv - 1)
    def _finalize():
        # Deferred normalization: approx reciprocal goes to the EUP slot.
        o_ref[0, 0] = (acc_sc[...] * pl.reciprocal(l_sc[...], approx=True)
                       ).astype(o_ref.dtype)


def pallas_gqa_attention(q, k, v, masked=True, *, tq=256, tkv=256):
    """q: (B, Hq, T, D), k/v: (B, Hkv, T, D) -> (B, Hq, T, D).

    Grouped-query: query head h reads kv head h // (Hq // Hkv) through the
    BlockSpec index_map (no materialized repeat). Grid keeps heads of the same
    group adjacent so K/V blocks can be reused across them."""
    B, Hq, T, D = q.shape
    Hkv = k.shape[1]
    n_rep = Hq // Hkv

    tq = _pick_tile(T, tq, 8)
    tkv = _pick_tile(T, tkv, 8)
    n_q = T // tq
    n_kv = T // tkv

    kernel = functools.partial(_flash_attn_kernel, masked=masked,
                               scale=float(D) ** -0.5, tq=tq, tkv=tkv)
    return pl.pallas_call(
        kernel,
        out_shape=jax.ShapeDtypeStruct((B, Hq, T, D), jnp.float32),
        grid_spec=pltpu.PrefetchScalarGridSpec(
            num_scalar_prefetch=0,
            grid=(B, Hq, n_q, n_kv),
            in_specs=[
                pl.BlockSpec((1, 1, tq, D),
                             lambda b, h, qi, ki: (b, h, qi, 0)),
                pl.BlockSpec((1, 1, tkv, D),
                             lambda b, h, qi, ki: (b, h // n_rep, ki, 0)),
                pl.BlockSpec((1, 1, tkv, D),
                             lambda b, h, qi, ki: (b, h // n_rep, ki, 0)),
            ],
            out_specs=pl.BlockSpec((1, 1, tq, D),
                                   lambda b, h, qi, ki: (b, h, qi, 0)),
            scratch_shapes=[pltpu.VMEM((tq, 1), jnp.float32),   # running max
                            pltpu.VMEM((tq, 1), jnp.float32),   # running sum
                            pltpu.VMEM((tq, D), jnp.float32)]), # running acc
        compiler_params=pltpu.CompilerParams(
            dimension_semantics=("parallel", "parallel", "parallel",
                                 "arbitrary")),
    )(q, k, v)


# ------------------------------ JAX glue ------------------------------------

def rope(x, base=10000.0):
    """Rotary position embeddings, rotate-half convention. x: (B, H, T, D)."""
    # TODO(synk): RotaryPositionEmbeddings source not provided; standard
    #             rotate-half RoPE with theta=10000 is used here.
    B, H, T, D = x.shape
    half = D // 2
    inv_freq = 1.0 / (base ** (jnp.arange(0, half, dtype=jnp.float32) / half))
    angles = jnp.arange(T, dtype=jnp.float32)[:, None] * inv_freq[None, :]
    cos = jnp.concatenate([jnp.cos(angles), jnp.cos(angles)], axis=-1)  # (T, D)
    sin = jnp.concatenate([jnp.sin(angles), jnp.sin(angles)], axis=-1)  # (T, D)
    x1, x2 = x[..., :half], x[..., half:]
    rot = jnp.concatenate([-x2, x1], axis=-1)
    return x * cos[None, None] + rot * sin[None, None]


class GroupedQueryAttentionPallas:
    def __init__(self, d_model, num_q_heads, num_kv_heads, masked=True, key=None):
        assert d_model % num_q_heads == 0
        assert num_q_heads % num_kv_heads == 0
        self.d_model = d_model
        self.num_q_heads = num_q_heads
        self.num_kv_heads = num_kv_heads
        self.head_dim = d_model // num_q_heads
        self.dim_kv = num_kv_heads * self.head_dim
        self.masked = masked

        key = jax.random.PRNGKey(0) if key is None else key
        k1, k2, k3, k4 = jax.random.split(key, 4)
        scale = 0.02
        # PyTorch nn.Linear weight layout: (out_features, in_features)
        self.w_q = scale * jax.random.normal(k1, (d_model, d_model), jnp.float32)
        self.w_k = scale * jax.random.normal(k2, (self.dim_kv, d_model), jnp.float32)
        self.w_v = scale * jax.random.normal(k3, (self.dim_kv, d_model), jnp.float32)
        self.w_o = scale * jax.random.normal(k4, (d_model, d_model), jnp.float32)
        # Pre-transposed (in, out) copies, built once (no per-call weight.T).
        self.w_q_t = jnp.asarray(self.w_q.T)
        self.w_k_t = jnp.asarray(self.w_k.T)
        self.w_v_t = jnp.asarray(self.w_v.T)
        self.w_o_t = jnp.asarray(self.w_o.T)

    def __call__(self, q_embs, k_embs, v_embs):
        B, T, d_model = q_embs.shape
        Hq, Hkv, D = self.num_q_heads, self.num_kv_heads, self.head_dim

        q = pallas_linear(q_embs.reshape(B * T, d_model), self.w_q_t).reshape(B, T, d_model)
        k = pallas_linear(k_embs.reshape(B * T, d_model), self.w_k_t).reshape(B, T, self.dim_kv)
        v = pallas_linear(v_embs.reshape(B * T, d_model), self.w_v_t).reshape(B, T, self.dim_kv)

        # (B, T, H*D) -> (B, H, T, D)
        q = q.reshape(B, T, Hq, D).transpose(0, 2, 1, 3)
        k = k.reshape(B, T, Hkv, D).transpose(0, 2, 1, 3)
        v = v.reshape(B, T, Hkv, D).transpose(0, 2, 1, 3)

        q = rope(q)
        k = rope(k)

        out = pallas_gqa_attention(q, k, v, masked=self.masked)  # (B, Hq, T, D)

        out = out.transpose(0, 2, 1, 3).reshape(B, T, d_model)
        out = pallas_linear(out.reshape(B * T, d_model), self.w_o_t).reshape(B, T, d_model)
        return out

    # Pure-JAX reference for verification (mirrors the PyTorch forward).
    def reference(self, q_embs, k_embs, v_embs):
        B, T, d_model = q_embs.shape
        Hq, Hkv, D = self.num_q_heads, self.num_kv_heads, self.head_dim
        n_rep = Hq // Hkv

        q = q_embs @ self.w_q.T
        k = k_embs @ self.w_k.T
        v = v_embs @ self.w_v.T
        q = q.reshape(B, T, Hq, D).transpose(0, 2, 1, 3)
        k = k.reshape(B, T, Hkv, D).transpose(0, 2, 1, 3)
        v = v.reshape(B, T, Hkv, D).transpose(0, 2, 1, 3)
        q = rope(q)
        k = rope(k)
        k = jnp.repeat(k, n_rep, axis=1)
        v = jnp.repeat(v, n_rep, axis=1)
        scores = jnp.einsum('bhtd,bhsd->bhts', q, k) * (D ** -0.5)
        if self.masked:
            mask = jnp.tril(jnp.ones((T, T), dtype=bool))
            scores = jnp.where(mask, scores, -jnp.inf)
        wei = jax.nn.softmax(scores, axis=-1)
        out = jnp.einsum('bhts,bhsd->bhtd', wei, v)
        out = out.transpose(0, 2, 1, 3).reshape(B, T, d_model)
        return out @ self.w_o.T


if __name__ == "__main__":
    B, T, d_model = 2, 8, 32
    num_q_heads, num_kv_heads = 4, 2

    key = jax.random.PRNGKey(0)
    kq, kk, kv, kw = jax.random.split(key, 4)
    q_embs = jax.random.normal(kq, (B, T, d_model), jnp.float32)
    k_embs = jax.random.normal(kk, (B, T, d_model), jnp.float32)
    v_embs = jax.random.normal(kv, (B, T, d_model), jnp.float32)

    gqa = GroupedQueryAttentionPallas(d_model, num_q_heads, num_kv_heads,
                                      masked=True, key=kw)

    out = gqa(q_embs, k_embs, v_embs)
    out = jax.block_until_ready(out)

    ref = gqa.reference(q_embs, k_embs, v_embs)
    assert out.shape == (B, T, d_model)
    # Tolerance accounts for the EUP approximate-reciprocal softmax normalization.
    assert jnp.allclose(out, ref, atol=1e-3, rtol=1e-3), \
        f"max err {jnp.max(jnp.abs(out - ref))}"

    print("KERNEL_OK")
</pallas_src>

<mosaic_0001>
module attributes {stable_mosaic.version = 11 : i64} {
  func.func @_matmul_kernel(%arg0: i32, %arg1: i32, %arg2: i32, %arg3: memref<16x32xf32, #tpu.memory_space<vmem>>, %arg4: memref<32x32xf32, #tpu.memory_space<vmem>>, %arg5: memref<16x32xf32, #tpu.memory_space<vmem>>, %arg6: memref<16x32xf32, #tpu.memory_space<vmem>>) attributes {dimension_semantics = [#tpu.dimension_semantics<parallel>, #tpu.dimension_semantics<parallel>, #tpu.dimension_semantics<arbitrary>], iteration_bounds = array<i64: 1, 1, 1>, scalar_prefetch = 0 : i64, scratch_operands = 1 : i64, tpu.core_type = #tpu.core_type<tc>, window_params = [{transform_indices = @transform_0, window_bounds = array<i64: 16, 32>}, {transform_indices = @transform_1, window_bounds = array<i64: 32, 32>}, {transform_indices = @transform_2, window_bounds = array<i64: 16, 32>}]} {
    %c0_i32 = arith.constant 0 : i32
    %0 = arith.cmpi eq, %arg2, %c0_i32 : i32
    %1 = arith.extui %0 : i1 to i32
    %c0_i32_0 = arith.constant 0 : i32
    %2 = arith.cmpi ne, %1, %c0_i32_0 : i32
    scf.if %2 {
      %cst_10 = arith.constant 0.000000e+00 : f32
      %12 = vector.broadcast %cst_10 : f32 to vector<16x32xf32>
      %c0_11 = arith.constant 0 : index
      %c0_12 = arith.constant 0 : index
      %13 = vector.load %arg6[%c0_11, %c0_12] : memref<16x32xf32, #tpu.memory_space<vmem>>, vector<16x32xf32>
      tpu.vector_store %arg6[%c0_11, %c0_12], %12 {strides = array<i32>} : memref<16x32xf32, #tpu.memory_space<vmem>>, vector<16x32xf32>,
    } else {
    }
    %c0 = arith.constant 0 : index
    %c0_1 = arith.constant 0 : index
    %3 = vector.load %arg6[%c0, %c0_1] : memref<16x32xf32, #tpu.memory_space<vmem>>, vector<16x32xf32>
    %c0_2 = arith.constant 0 : index
    %c0_3 = arith.constant 0 : index
    %4 = vector.load %arg3[%c0_2, %c0_3] : memref<16x32xf32, #tpu.memory_space<vmem>>, vector<16x32xf32>
    %c0_4 = arith.constant 0 : index
    %c0_5 = arith.constant 0 : index
    %5 = vector.load %arg4[%c0_4, %c0_5] : memref<32x32xf32, #tpu.memory_space<vmem>>, vector<32x32xf32>
    %cst = arith.constant dense<0.000000e+00> : vector<16x32xf32>
    %6 = tpu.matmul %4, %5, %cst {dimension_numbers = #tpu.dot_dimension_numbers<[1], [0], [0], [1], [0, 0, 1, 1], [], []>} : vector<16x32xf32>, vector<32x32xf32>, vector<16x32xf32> -> vector<16x32xf32>
    %7 = arith.addf %3, %6 : vector<16x32xf32>
    %c0_6 = arith.constant 0 : index
    %c0_7 = arith.constant 0 : index
    %8 = vector.load %arg6[%c0_6, %c0_7] : memref<16x32xf32, #tpu.memory_space<vmem>>, vector<16x32xf32>
    tpu.vector_store %arg6[%c0_6, %c0_7], %7 {strides = array<i32>} : memref<16x32xf32, #tpu.memory_space<vmem>>, vector<16x32xf32>,
    %c0_i32_8 = arith.constant 0 : i32
    %9 = arith.cmpi eq, %arg2, %c0_i32_8 : i32
    %10 = arith.extui %9 : i1 to i32
    %c0_i32_9 = arith.constant 0 : i32
    %11 = arith.cmpi ne, %10, %c0_i32_9 : i32
    scf.if %11 {
      %c0_10 = arith.constant 0 : index
      %c0_11 = arith.constant 0 : index
      %12 = vector.load %arg6[%c0_10, %c0_11] : memref<16x32xf32, #tpu.memory_space<vmem>>, vector<16x32xf32>
      %c0_12 = arith.constant 0 : index
      %c0_13 = arith.constant 0 : index
      %13 = vector.load %arg5[%c0_12, %c0_13] : memref<16x32xf32, #tpu.memory_space<vmem>>, vector<16x32xf32>
      tpu.vector_store %arg5[%c0_12, %c0_13], %12 {strides = array<i32>} : memref<16x32xf32, #tpu.memory_space<vmem>>, vector<16x32xf32>,
    } else {
    }
    return
  }
  func.func @transform_0(%arg0: i32, %arg1: i32, %arg2: i32) -> (i32, i32) {
    %c0_i32 = arith.constant 0 : i32
    return %arg0, %arg2 : i32, i32
  }
  func.func @transform_1(%arg0: i32, %arg1: i32, %arg2: i32) -> (i32, i32) {
    %c0_i32 = arith.constant 0 : i32
    return %arg2, %arg1 : i32, i32
  }
  func.func @transform_2(%arg0: i32, %arg1: i32, %arg2: i32) -> (i32, i32) {
    %c0_i32 = arith.constant 0 : i32
    return %arg0, %arg1 : i32, i32
  }
}

</mosaic_0001>

<bundles_post_ra>
// kernel: tpu_custom_call.1
= control target key start
LH: loop header
LB: loop body
LE: loop exit
PB: predicated region body
PF: predicated region fallthrough
CT: control target
= control target key end

     0   :  { %7 = vsyncpa [#allocation4], 0  ;;  %s345_s0 = inlined_call_operand.hbm [shape: f32[16,32], index: 0, kind: input, shape index: {}]   ;;  %s346_s1 = inlined_call_operand.hbm [shape: f32[32,32], index: 1, kind: input, shape index: {}]   ;;  %s347_s2 = inlined_call_operand.hbm [shape: f32[16,32], index: 2, kind: output, shape index: {}]  }
   0x1   :  { %8 = vsyncpa [#allocation7], 0 }
   0x2   :  { %9 = vsyncpa [#allocation5], 0  ;;  %s271_s9 = smov [#allocation3]   ;;  %s199_s13 = scalar_lea.hbm %s345_s0, 256 }
   0x3   :  { %s15_s10 = sshll.u32 %s271_s9, 4  ;;  %p200_p0 = scmp.ne.s32.totalorder %s345_s0, %s199_s13  ;;  %s16_s10 = int_to_ptr.vmem [resolvable:$true] %s15_s10 }
   0x4   :  { %p203_p1 = scmp.lt.u32.totalorder %s199_s13, %s345_s0 }
   0x6   :  { %p205_p2 = pnand %p203_p1, %p200_p0 }
   0x8   :  { %208 = shalt.err (!%p205_p2)
}
   0x9   :  { %s209_s18 = scalar_lea.vmem %s16_s10, 256  ;;  %p214_p4 = scmp.lt.s32.totalorder %s16_s10, %s16_s10 }
   0xa   :  { %p210_p3 = scmp.ne.s32.totalorder %s16_s10, %s209_s18  ;;  %p215_p5 = scmp.lt.s32.totalorder %s209_s18, %s209_s18 }
   0xc   :  { %p216_p6 = por %p215_p5, %p214_p4 }
   0xe   :  { %p217_p7 = pnand %p216_p6, %p210_p3 }
  0x10   :  { %220 = shalt.err (!%p217_p7)
}
  0x11   :  { %s272_s19 = smov 128   ;;  %s273_s20 = smov 8  }
  0x12   :  { %21 = dma.hbm_to_vmem [thread:$0]  %s345_s0, 256, %s16_s10, [#allocation4], %s272_s19, %s272_s19, %s273_s20  }
  0x13   :  { %s274_s23 = smov [#allocation6]   ;;  %s221_s27 = scalar_lea.hbm %s346_s1, 512 }
  0x14   :  { %s27_s24 = sshll.u32 %s274_s23, 4  ;;  %p222_p8 = scmp.ne.s32.totalorder %s346_s1, %s221_s27  ;;  %s28_s24 = int_to_ptr.vmem [resolvable:$true] %s27_s24 }
  0x15   :  { %p225_p9 = scmp.lt.u32.totalorder %s221_s27, %s346_s1 }
  0x17   :  { %p227_p10 = pnand %p225_p9, %p222_p8 }
  0x19   :  { %230 = shalt.err (!%p227_p10)
}
  0x1a   :  { %s231_s4 = scalar_lea.vmem %s28_s24, 512  ;;  %p236_p12 = scmp.lt.s32.totalorder %s28_s24, %s28_s24 }
  0x1b   :  { %p232_p11 = scmp.ne.s32.totalorder %s28_s24, %s231_s4  ;;  %p237_p13 = scmp.lt.s32.totalorder %s231_s4, %s231_s4 }
  0x1d   :  { %p238_p0 = por %p237_p13, %p236_p12 }
  0x1f   :  { %p239_p1 = pnand %p238_p0, %p232_p11 }
  0x21   :  { %242 = shalt.err (!%p239_p1)
}
  0x22   :  { %33 = dma.hbm_to_vmem [thread:$0]  %s346_s1, 512, %s28_s24, [#allocation7], %s272_s19, %s272_s19, %s273_s20  }
  0x23   :  { %265 = dma.done.wait [#allocation4], 256  }
  0x24   :  { %266 = vsyncadd [#allocation4], 4294967040 }
  0x25   :  { %267 = dma.done.wait [#allocation7], 512  }
  0x26   :  { %268 = vsyncadd [#allocation7], 4294966784  ;;  %vm44_vm0 = vcmask 261120   ;;  %v275_v0 = vmov 0.0   ;;  %v51_v1 = vld [vmem:[#allocation6] sm:$0xff]  ;;  %v52_v2 = vld [vmem:[#allocation6 + $0x8] sm:$0xff] }
  0x27   :  { %46 = vst.msk [vmem:[#allocation2 + $0x8] sm:$0xff] %vm44_vm0, %v275_v0  ;;  %45 = vst.msk [vmem:[#allocation2] sm:$0xff] %vm44_vm0, %v275_v0  ;;  %v53_v3 = vld [vmem:[#allocation6 + $0x10] sm:$0xff]  ;;  %v185_v4 = vpack.c.bf16 %v52_v2, %v51_v1  ;;  %v54_v5 = vld [vmem:[#allocation6 + $0x18] sm:$0xff]  ;;  %s276_s1 = smov [#allocation8]  }
  0x28   :  { %v49_v6 = vld [vmem:[#allocation3] sm:$0xff]  ;;  %v189_v7 = vpack.c.bf16 %v54_v5, %v53_v3  ;;  %v50_v8 = vld [vmem:[#allocation3 + $0x8] sm:$0xff]  ;;  %s153_s6 = sshll.u32 %s276_s1, 4  ;;  %s154_s6 = int_to_ptr.vmem [resolvable:$true] %s153_s6 }
  0x29   :  { %182 = vmatprep.mubr.msk.f32.mxu0 %vm44_vm0, %v49_v6  ;;  %186 = vmatprep.subr.bf16.mxu0 %v185_v4  ;;  %s243_s7 = scalar_lea.vmem %s154_s6, 256  ;;  %p248_p3 = scmp.lt.s32.totalorder %s154_s6, %s154_s6 }
  0x2a   :  { %188 = vmatpush3.bf16.msra.mxu0 %v185_v4  ;;  %p244_p2 = scmp.ne.s32.totalorder %s154_s6, %s243_s7  ;;  %p249_p4 = scmp.lt.s32.totalorder %s243_s7, %s243_s7 }
  0x2b   :  { %190 = vmatprep.subr.bf16.mxu0 %v189_v7 }
  0x2c   :  { %p250_p5 = por %p249_p4, %p248_p3 }
  0x2e   :  { %192 = vmatpush3.bf16.msra.mxu0 %v189_v7  ;;  %v48_v9 = vld [vmem:[#allocation2 + $0x8] sm:$0xff]  ;;  %v47_v10 = vld [vmem:[#allocation2] sm:$0xff]  ;;  %p251_p6 = pnand %p250_p5, %p244_p2 }
  0x31   :  { %183 = vmatmul.mubr.msk.f32.vlgmr.msra.gmra.mrb[0].mxu0 %vm44_vm0, %v50_v8 }
 0x104   :  { %v184_v11 = vpop.f32.mrb[0].mxu0 }
 0x105   :  { %v138_v12 = vadd.f32 %v184_v11, %v48_v9  ;;  %v128_v13 = vpop.f32.mrb[1].mxu0 }
 0x106   :  { %v137_v14 = vadd.f32 %v128_v13, %v47_v10 }
 0x107   :  { %140 = vst.msk [vmem:[#allocation2 + $0x8] sm:$0xff] %vm44_vm0, %v138_v12 }
 0x108   :  { %139 = vst.msk [vmem:[#allocation2] sm:$0xff] %vm44_vm0, %v137_v14 }
 0x10e   :  { %v145_v15 = vld [vmem:[#allocation2 + $0x8] sm:$0xff] }
 0x10f   :  { %v144_v16 = vld [vmem:[#allocation2] sm:$0xff]  ;;  %147 = vst.msk [vmem:[#allocation8 + $0x8] sm:$0xff] %vm44_vm0, %v145_v15 }
 0x110   :  { %146 = vst.msk [vmem:[#allocation8] sm:$0xff] %vm44_vm0, %v144_v16 }
 0x111   :  { %254 = shalt.err (!%p251_p6)
}
 0x112   :  { %s255_s10 = scalar_lea.hbm %s347_s2, 256 }
 0x113   :  { %p256_p7 = scmp.ne.s32.totalorder %s347_s2, %s255_s10  ;;  %p259_p8 = scmp.lt.u32.totalorder %s255_s10, %s347_s2 }
 0x115   :  { %p261_p9 = pnand %p259_p8, %p256_p7 }
 0x117   :  { %264 = shalt.err (!%p261_p9)
}
 0x118   :  { %159 = dma.vmem_to_hbm [thread:$0]  %s154_s6, 256, %s347_s2, [#allocation5], %s272_s19, %s272_s19, %s273_s20  }
 0x119   :  { %269 = dma.done.wait [#allocation5], 256  }
 0x11a   :  { %270 = vsyncadd [#allocation5], 4294967040 }
 0x11b   :  { %163 = vsyncpa [#allocation4], 1 }
 0x11c   :  { %164 = vsyncpa [#allocation7], 1 }
 0x11d   :  { %165 = vsyncpa [#allocation5], 1 }

</bundles_post_ra>
